<compile_context>
chip_gen: v7x
topology: tpu7x:2x2x1
jax: 0.10.0
libtpu: 0.0.40
codegen_flags: <defaults>
</compile_context>

<pallas_src>
import functools

import jax
import jax.numpy as jnp
from jax import lax
from jax.experimental import pallas as pl
from jax.experimental.pallas import tpu as pltpu

EPS = 1e-5

_VMEM = pl.BlockSpec(memory_space=pltpu.MemorySpace.VMEM)


# ------------------------------ fused kernel --------------------------------

def _block_kernel(x_ref, m1_ref, g1_ref, b1_ref, m2_ref, g2_ref, b2_ref,
                  out_ref, pad_ref, *, C):
    """x_ref/out_ref: (N, H, W*C) lane-dense f32 activations.
    m*_ref: (3*W*Cin, W*Cout) stacked banded conv matrices, bf16.
    g*/b*_ref: (1, W*C) lane-tiled f32 BN affine params.
    pad_ref: (N, H+2, W*C) f32 VMEM scratch (H halo)."""
    N, H, WC = out_ref.shape
    Wdim = WC // C
    NH = N * H
    inv_count = 1.0 / float(N * H * Wdim)

    def chan_allsum(v):
        # v: (R, WC) f32. Log-step cyclic roll-add along lanes; afterwards every
        # lane w*C+c holds sum_w' v[r, w'*C+c]  (requires Wdim power of two).
        s = v
        shift = C
        while shift < WC:
            s = s + pltpu.roll(s, shift, axis=1)
            shift *= 2
        return s

    def batchnorm(y2d, gamma_l, beta_l, relu):
        # Training-mode BN, one pass over y: per-channel sum and sum-of-squares
        # reduced together; biased variance via E[y^2] - mean^2 (f32).
        col = jnp.concatenate(
            [jnp.sum(y2d, axis=0, keepdims=True),
             jnp.sum(y2d * y2d, axis=0, keepdims=True)], axis=0)   # (2, WC)
        stats = chan_allsum(col) * inv_count
        mean_l = stats[0:1, :]
        var_l = stats[1:2, :] - mean_l * mean_l
        o = (y2d - mean_l) * (gamma_l * lax.rsqrt(var_l + EPS)) + beta_l
        return jnp.maximum(o, 0.0) if relu else o

    def conv(m_ref):
        # Single stacked-K matmul: (NH, 3*WC) @ (3*WC, WC).  The three ky row
        # windows are concatenated along lanes; operands bf16, accumulation f32.
        rows3 = jnp.concatenate(
            [pad_ref[:, ky:ky + H, :].reshape(NH, WC).astype(jnp.bfloat16)
             for ky in range(3)], axis=1)
        return jnp.dot(rows3, m_ref[...], preferred_element_type=jnp.float32)

    # Zero ONLY the two halo rows; the interior is fully overwritten below.
    pad_ref[:, 0:1, :] = jnp.zeros((N, 1, WC), pad_ref.dtype)
    pad_ref[:, H + 1:H + 2, :] = jnp.zeros((N, 1, WC), pad_ref.dtype)

    # ---- stage 1: y = relu(bn1(conv1(x))) ----
    pad_ref[:, 1:H + 1, :] = x_ref[...]
    y = batchnorm(conv(m1_ref), g1_ref[...], b1_ref[...], relu=True)

    # ---- stage 2: out = relu(x + bn2(conv2(y))) ---- (halo rows still zero)
    pad_ref[:, 1:H + 1, :] = y.reshape(N, H, WC)
    z = batchnorm(conv(m2_ref), g2_ref[...], b2_ref[...], relu=False)

    res = jnp.maximum(x_ref[...].reshape(NH, WC) + z, 0.0)
    out_ref[...] = res.reshape(N, H, WC)


# ----------------------------- wrapper helpers -------------------------------

def _band_weights(w_hwio, Wdim):
    """Build the stacked banded matrix M of shape (3*W*Cin, W*Cout) such that
    M[ky*W*Cin + wi*Cin + ci, wo*Cout + co] = w[ky, wi-wo+1, ci, co] for
    |wi-wo| <= 1, else 0 (this also implements the zero padding along W)."""
    kH, kW, Cin, Cout = w_hwio.shape
    wi = jnp.arange(Wdim)[:, None]
    wo = jnp.arange(Wdim)[None, :]
    kx = wi - wo + 1                                           # (W, W)
    valid = ((kx >= 0) & (kx < kW)).astype(w_hwio.dtype)
    kx_c = jnp.clip(kx, 0, kW - 1)
    blocks = w_hwio[:, kx_c, :, :]                             # (kH, W, W, Cin, Cout)
    blocks = blocks * valid[None, :, :, None, None]
    m = jnp.transpose(blocks, (0, 1, 3, 2, 4))                 # (kH, W, Cin, W, Cout)
    return m.reshape(kH * Wdim * Cin, Wdim * Cout)             # [M0; M1; M2] along K


@jax.jit
def resnet_basic_block_nhwc(x_nhwc, params):
    """Forward pass of RestNetBasicBlock (stride=1, Cin==Cout), NHWC layout.
    This is the production entry point: no layout transposes anywhere."""
    w1, cb1, g1, bb1, w2, cb2, g2, bb2 = params
    N, H, W, C = x_nhwc.shape
    WC = W * C
    assert W & (W - 1) == 0, "lane-roll BN reduction assumes W is a power of 2"

    # Free contiguous merge of the last two dims -> lane-dense (N, H, W*C).
    x_ld = x_nhwc.reshape(N, H, WC).astype(jnp.float32)

    # Parameter preprocessing (tiny, O(params)).  Weights go bf16 for the MXU.
    m1 = _band_weights(w1.astype(jnp.float32), W).astype(jnp.bfloat16)   # (3*WC, WC)
    m2 = _band_weights(w2.astype(jnp.float32), W).astype(jnp.bfloat16)
    g1_l = jnp.tile(g1.reshape(1, C).astype(jnp.float32), (1, W))        # (1, WC)
    b1_l = jnp.tile(bb1.reshape(1, C).astype(jnp.float32), (1, W))
    g2_l = jnp.tile(g2.reshape(1, C).astype(jnp.float32), (1, W))
    b2_l = jnp.tile(bb2.reshape(1, C).astype(jnp.float32), (1, W))
    # Conv biases intentionally not passed: training-mode BN cancels them.
    del cb1, cb2

    out_ld = pl.pallas_call(
        functools.partial(_block_kernel, C=C),
        out_shape=jax.ShapeDtypeStruct((N, H, WC), jnp.float32),
        in_specs=[_VMEM] * 7,
        out_specs=_VMEM,
        scratch_shapes=[pltpu.VMEM((N, H + 2, WC), jnp.float32)],
        input_output_aliases={0: 0},
    )(x_ld, m1, g1_l, b1_l, m2, g2_l, b2_l)

    return out_ld.reshape(N, H, W, C)


@jax.jit
def resnet_basic_block_nchw(x_nchw, params):
    """PyTorch-interface adapter (NCHW in/out).  Only use when forced to;
    the NHWC entry point above avoids the two HBM transposes."""
    x_nhwc = jnp.transpose(x_nchw, (0, 2, 3, 1))
    return jnp.transpose(resnet_basic_block_nhwc(x_nhwc, params), (0, 3, 1, 2))


# --------------------------- pure-JAX reference ------------------------------

def _ref_block_nhwc(x, params):
    w1, cb1, g1, bb1, w2, cb2, g2, bb2 = params

    def conv(x, w, cb):  # w: (3,3,Cin,Cout) HWIO
        o = lax.conv_general_dilated(
            x, w, window_strides=(1, 1), padding=((1, 1), (1, 1)),
            dimension_numbers=('NHWC', 'HWIO', 'NHWC'))
        return o + cb.reshape(1, 1, 1, -1)

    def bn(y, g, b):
        m = jnp.mean(y, axis=(0, 1, 2), keepdims=True)
        v = jnp.mean((y - m) ** 2, axis=(0, 1, 2), keepdims=True)
        return (y - m) * lax.rsqrt(v + EPS) * g.reshape(1, 1, 1, -1) \
            + b.reshape(1, 1, 1, -1)

    o = jax.nn.relu(bn(conv(x, w1, cb1), g1, bb1))
    o = bn(conv(o, w2, cb2), g2, bb2)
    return jax.nn.relu(x + o)


# ---------------------------------- main -------------------------------------

if __name__ == "__main__":
    N, C, H, W = 2, 8, 16, 16          # in_channels == out_channels, stride=1

    key = jax.random.PRNGKey(0)
    k_x, k_w1, k_w2, k_b1, k_b2 = jax.random.split(key, 5)

    # PyTorch-style NCHW input; converted ONCE to NHWC at model ingest.
    x_nchw = jax.random.normal(k_x, (N, C, H, W), jnp.float32)
    x_nhwc = jnp.transpose(x_nchw, (0, 2, 3, 1))

    # Conv weights stored as (3, 3, Cin, Cout) (HWIO).
    w1 = jax.random.normal(k_w1, (3, 3, C, C), jnp.float32) * 0.1
    w2 = jax.random.normal(k_w2, (3, 3, C, C), jnp.float32) * 0.1
    cb1 = jax.random.normal(k_b1, (1, C), jnp.float32) * 0.1
    cb2 = jax.random.normal(k_b2, (1, C), jnp.float32) * 0.1
    # BatchNorm affine params (deterministic, non-trivial)
    g1 = (1.0 + 0.05 * jnp.arange(C, dtype=jnp.float32)).reshape(1, C)
    bb1 = (0.02 * jnp.arange(C, dtype=jnp.float32)).reshape(1, C)
    g2 = (1.0 - 0.03 * jnp.arange(C, dtype=jnp.float32)).reshape(1, C)
    bb2 = (-0.01 * jnp.arange(C, dtype=jnp.float32)).reshape(1, C)

    params = (w1, cb1, g1, bb1, w2, cb2, g2, bb2)

    out = jax.block_until_ready(resnet_basic_block_nhwc(x_nhwc, params))
    ref = jax.block_until_ready(_ref_block_nhwc(x_nhwc, params))

    assert out.shape == (N, H, W, C), out.shape
    # bf16 MXU operands -> tolerance loosened vs the pure-f32 reference.
    assert jnp.allclose(out, ref, atol=5e-2, rtol=5e-2), \
        float(jnp.max(jnp.abs(out - ref)))

    print("KERNEL_OK")
</pallas_src>

<mosaic_0001>
module attributes {stable_mosaic.version = 11 : i64} {
  func.func @_block_kernel(%arg0: memref<2x16x128xf32, #tpu.memory_space<vmem>>, %arg1: memref<384x128xbf16, #tpu.memory_space<vmem>>, %arg2: memref<1x128xf32, #tpu.memory_space<vmem>>, %arg3: memref<1x128xf32, #tpu.memory_space<vmem>>, %arg4: memref<384x128xbf16, #tpu.memory_space<vmem>>, %arg5: memref<1x128xf32, #tpu.memory_space<vmem>>, %arg6: memref<1x128xf32, #tpu.memory_space<vmem>>, %arg7: memref<2x16x128xf32, #tpu.memory_space<vmem>>, %arg8: memref<2x18x128xf32, #tpu.memory_space<vmem>>) attributes {dimension_semantics = [], scalar_prefetch = 0 : i64, scratch_operands = 1 : i64, tpu.core_type = #tpu.core_type<tc>} {
    %cst = arith.constant 0.000000e+00 : f32
    %0 = vector.broadcast %cst : f32 to vector<2x1x128xf32>
    %c0 = arith.constant 0 : index
    %c0_0 = arith.constant 0 : index
    %c0_1 = arith.constant 0 : index
    %1 = vector.load %arg8[%c0, %c0_0, %c0_1] : memref<2x18x128xf32, #tpu.memory_space<vmem>>, vector<2x1x128xf32>
    tpu.vector_store %arg8[%c0, %c0_0, %c0_1], %0 {strides = array<i32>} : memref<2x18x128xf32, #tpu.memory_space<vmem>>, vector<2x1x128xf32>,
    %cst_2 = arith.constant 0.000000e+00 : f32
    %2 = vector.broadcast %cst_2 : f32 to vector<2x1x128xf32>
    %c0_3 = arith.constant 0 : index
    %c17 = arith.constant 17 : index
    %c0_4 = arith.constant 0 : index
    %3 = vector.load %arg8[%c0_3, %c17, %c0_4] : memref<2x18x128xf32, #tpu.memory_space<vmem>>, vector<2x1x128xf32>
    tpu.vector_store %arg8[%c0_3, %c17, %c0_4], %2 {strides = array<i32>} : memref<2x18x128xf32, #tpu.memory_space<vmem>>, vector<2x1x128xf32>,
    %c0_5 = arith.constant 0 : index
    %c0_6 = arith.constant 0 : index
    %c0_7 = arith.constant 0 : index
    %4 = vector.load %arg0[%c0_5, %c0_6, %c0_7] : memref<2x16x128xf32, #tpu.memory_space<vmem>>, vector<2x16x128xf32>
    %c0_8 = arith.constant 0 : index
    %c1 = arith.constant 1 : index
    %c0_9 = arith.constant 0 : index
    %5 = vector.load %arg8[%c0_8, %c1, %c0_9] : memref<2x18x128xf32, #tpu.memory_space<vmem>>, vector<2x16x128xf32>
    tpu.vector_store %arg8[%c0_8, %c1, %c0_9], %4 {strides = array<i32>} : memref<2x18x128xf32, #tpu.memory_space<vmem>>, vector<2x16x128xf32>,
    %c0_10 = arith.constant 0 : index
    %c0_11 = arith.constant 0 : index
    %c0_12 = arith.constant 0 : index
    %6 = vector.load %arg8[%c0_10, %c0_11, %c0_12] : memref<2x18x128xf32, #tpu.memory_space<vmem>>, vector<2x16x128xf32>
    %7 = vector.shape_cast %6 : vector<2x16x128xf32> to vector<32x128xf32>
    %8 = arith.truncf %7 : vector<32x128xf32> to vector<32x128xbf16>
    %c0_13 = arith.constant 0 : index
    %c1_14 = arith.constant 1 : index
    %c0_15 = arith.constant 0 : index
    %9 = vector.load %arg8[%c0_13, %c1_14, %c0_15] : memref<2x18x128xf32, #tpu.memory_space<vmem>>, vector<2x16x128xf32>
    %10 = vector.shape_cast %9 : vector<2x16x128xf32> to vector<32x128xf32>
    %11 = arith.truncf %10 : vector<32x128xf32> to vector<32x128xbf16>
    %c0_16 = arith.constant 0 : index
    %c2 = arith.constant 2 : index
    %c0_17 = arith.constant 0 : index
    %12 = vector.load %arg8[%c0_16, %c2, %c0_17] : memref<2x18x128xf32, #tpu.memory_space<vmem>>, vector<2x16x128xf32>
    %13 = vector.shape_cast %12 : vector<2x16x128xf32> to vector<32x128xf32>
    %14 = arith.truncf %13 : vector<32x128xf32> to vector<32x128xbf16>
    %15 = tpu.concatenate %8, %11, %14 in 1 : vector<32x128xbf16>, vector<32x128xbf16>, vector<32x128xbf16> -> vector<32x384xbf16>
    %c0_18 = arith.constant 0 : index
    %c0_19 = arith.constant 0 : index
    %16 = vector.load %arg1[%c0_18, %c0_19] : memref<384x128xbf16, #tpu.memory_space<vmem>>, vector<384x128xbf16>
    %cst_20 = arith.constant dense<0.000000e+00> : vector<32x128xf32>
    %17 = tpu.matmul %15, %16, %cst_20 {dimension_numbers = #tpu.dot_dimension_numbers<[1], [0], [0], [1], [0, 0, 1, 1], [], []>} : vector<32x384xbf16>, vector<384x128xbf16>, vector<32x128xf32> -> vector<32x128xf32>
    %c0_21 = arith.constant 0 : index
    %c0_22 = arith.constant 0 : index
    %18 = vector.load %arg2[%c0_21, %c0_22] : memref<1x128xf32, #tpu.memory_space<vmem>>, vector<1x128xf32>
    %c0_23 = arith.constant 0 : index
    %c0_24 = arith.constant 0 : index
    %19 = vector.load %arg3[%c0_23, %c0_24] : memref<1x128xf32, #tpu.memory_space<vmem>>, vector<1x128xf32>
    %cst_25 = arith.constant dense<0.000000e+00> : vector<128xf32>
    %20 = vector.multi_reduction <add>, %17, %cst_25 [0] : vector<32x128xf32> to vector<128xf32>
    %21 = vector.shape_cast %20 : vector<128xf32> to vector<1x128xf32>
    %22 = arith.mulf %17, %17 : vector<32x128xf32>
    %cst_26 = arith.constant dense<0.000000e+00> : vector<128xf32>
    %23 = vector.multi_reduction <add>, %22, %cst_26 [0] : vector<32x128xf32> to vector<128xf32>
    %24 = vector.shape_cast %23 : vector<128xf32> to vector<1x128xf32>
    %25 = tpu.concatenate %21, %24 in 0 : vector<1x128xf32>, vector<1x128xf32> -> vector<2x128xf32>
    %c8_i32 = arith.constant 8 : i32
    %26 = tpu.dynamic_rotate %25 by %c8_i32 dim 1 : vector<2x128xf32>, i32 -> vector<2x128xf32>
    %27 = arith.addf %25, %26 : vector<2x128xf32>
    %c16_i32 = arith.constant 16 : i32
    %28 = tpu.dynamic_rotate %27 by %c16_i32 dim 1 : vector<2x128xf32>, i32 -> vector<2x128xf32>
    %29 = arith.addf %27, %28 : vector<2x128xf32>
    %c32_i32 = arith.constant 32 : i32
    %30 = tpu.dynamic_rotate %29 by %c32_i32 dim 1 : vector<2x128xf32>, i32 -> vector<2x128xf32>
    %31 = arith.addf %29, %30 : vector<2x128xf32>
    %c64_i32 = arith.constant 64 : i32
    %32 = tpu.dynamic_rotate %31 by %c64_i32 dim 1 : vector<2x128xf32>, i32 -> vector<2x128xf32>
    %33 = arith.addf %31, %32 : vector<2x128xf32>
    %cst_27 = arith.constant 0.001953125 : f32
    %34 = vector.broadcast %cst_27 : f32 to vector<2x128xf32>
    %35 = arith.mulf %33, %34 : vector<2x128xf32>
    %36 = vector.extract_strided_slice %35 {offsets = [0, 0], sizes = [1, 128], strides = [1, 1]} : vector<2x128xf32> to vector<1x128xf32>
    %37 = vector.extract_strided_slice %35 {offsets = [1, 0], sizes = [1, 128], strides = [1, 1]} : vector<2x128xf32> to vector<1x128xf32>
    %38 = arith.mulf %36, %36 : vector<1x128xf32>
    %39 = arith.subf %37, %38 : vector<1x128xf32>
    %40 = vector.broadcast %36 : vector<1x128xf32> to vector<32x128xf32>
    %41 = arith.subf %17, %40 : vector<32x128xf32>
    %cst_28 = arith.constant 9.99999974E-6 : f32
    %42 = vector.broadcast %cst_28 : f32 to vector<1x128xf32>
    %43 = arith.addf %39, %42 : vector<1x128xf32>
    %44 = math.rsqrt %43 : vector<1x128xf32>
    %45 = arith.mulf %18, %44 : vector<1x128xf32>
    %46 = vector.broadcast %45 : vector<1x128xf32> to vector<32x128xf32>
    %47 = arith.mulf %41, %46 : vector<32x128xf32>
    %48 = vector.broadcast %19 : vector<1x128xf32> to vector<32x128xf32>
    %49 = arith.addf %47, %48 : vector<32x128xf32>
    %cst_29 = arith.constant 0.000000e+00 : f32
    %50 = vector.broadcast %cst_29 : f32 to vector<32x128xf32>
    %51 = arith.maximumf %49, %50 : vector<32x128xf32>
    %52 = vector.shape_cast %51 : vector<32x128xf32> to vector<2x16x128xf32>
    %c0_30 = arith.constant 0 : index
    %c1_31 = arith.constant 1 : index
    %c0_32 = arith.constant 0 : index
    %53 = vector.load %arg8[%c0_30, %c1_31, %c0_32] : memref<2x18x128xf32, #tpu.memory_space<vmem>>, vector<2x16x128xf32>
    tpu.vector_store %arg8[%c0_30, %c1_31, %c0_32], %52 {strides = array<i32>} : memref<2x18x128xf32, #tpu.memory_space<vmem>>, vector<2x16x128xf32>,
    %c0_33 = arith.constant 0 : index
    %c0_34 = arith.constant 0 : index
    %c0_35 = arith.constant 0 : index
    %54 = vector.load %arg8[%c0_33, %c0_34, %c0_35] : memref<2x18x128xf32, #tpu.memory_space<vmem>>, vector<2x16x128xf32>
    %55 = vector.shape_cast %54 : vector<2x16x128xf32> to vector<32x128xf32>
    %56 = arith.truncf %55 : vector<32x128xf32> to vector<32x128xbf16>
    %c0_36 = arith.constant 0 : index
    %c1_37 = arith.constant 1 : index
    %c0_38 = arith.constant 0 : index
    %57 = vector.load %arg8[%c0_36, %c1_37, %c0_38] : memref<2x18x128xf32, #tpu.memory_space<vmem>>, vector<2x16x128xf32>
    %58 = vector.shape_cast %57 : vector<2x16x128xf32> to vector<32x128xf32>
    %59 = arith.truncf %58 : vector<32x128xf32> to vector<32x128xbf16>
    %c0_39 = arith.constant 0 : index
    %c2_40 = arith.constant 2 : index
    %c0_41 = arith.constant 0 : index
    %60 = vector.load %arg8[%c0_39, %c2_40, %c0_41] : memref<2x18x128xf32, #tpu.memory_space<vmem>>, vector<2x16x128xf32>
    %61 = vector.shape_cast %60 : vector<2x16x128xf32> to vector<32x128xf32>
    %62 = arith.truncf %61 : vector<32x128xf32> to vector<32x128xbf16>
    %63 = tpu.concatenate %56, %59, %62 in 1 : vector<32x128xbf16>, vector<32x128xbf16>, vector<32x128xbf16> -> vector<32x384xbf16>
    %c0_42 = arith.constant 0 : index
    %c0_43 = arith.constant 0 : index
    %64 = vector.load %arg4[%c0_42, %c0_43] : memref<384x128xbf16, #tpu.memory_space<vmem>>, vector<384x128xbf16>
    %cst_44 = arith.constant dense<0.000000e+00> : vector<32x128xf32>
    %65 = tpu.matmul %63, %64, %cst_44 {dimension_numbers = #tpu.dot_dimension_numbers<[1], [0], [0], [1], [0, 0, 1, 1], [], []>} : vector<32x384xbf16>, vector<384x128xbf16>, vector<32x128xf32> -> vector<32x128xf32>
    %c0_45 = arith.constant 0 : index
    %c0_46 = arith.constant 0 : index
    %66 = vector.load %arg5[%c0_45, %c0_46] : memref<1x128xf32, #tpu.memory_space<vmem>>, vector<1x128xf32>
    %c0_47 = arith.constant 0 : index
    %c0_48 = arith.constant 0 : index
    %67 = vector.load %arg6[%c0_47, %c0_48] : memref<1x128xf32, #tpu.memory_space<vmem>>, vector<1x128xf32>
    %cst_49 = arith.constant dense<0.000000e+00> : vector<128xf32>
    %68 = vector.multi_reduction <add>, %65, %cst_49 [0] : vector<32x128xf32> to vector<128xf32>
    %69 = vector.shape_cast %68 : vector<128xf32> to vector<1x128xf32>
    %70 = arith.mulf %65, %65 : vector<32x128xf32>
    %cst_50 = arith.constant dense<0.000000e+00> : vector<128xf32>
    %71 = vector.multi_reduction <add>, %70, %cst_50 [0] : vector<32x128xf32> to vector<128xf32>
    %72 = vector.shape_cast %71 : vector<128xf32> to vector<1x128xf32>
    %73 = tpu.concatenate %69, %72 in 0 : vector<1x128xf32>, vector<1x128xf32> -> vector<2x128xf32>
    %c8_i32_51 = arith.constant 8 : i32
    %74 = tpu.dynamic_rotate %73 by %c8_i32_51 dim 1 : vector<2x128xf32>, i32 -> vector<2x128xf32>
    %75 = arith.addf %73, %74 : vector<2x128xf32>
    %c16_i32_52 = arith.constant 16 : i32
    %76 = tpu.dynamic_rotate %75 by %c16_i32_52 dim 1 : vector<2x128xf32>, i32 -> vector<2x128xf32>
    %77 = arith.addf %75, %76 : vector<2x128xf32>
    %c32_i32_53 = arith.constant 32 : i32
    %78 = tpu.dynamic_rotate %77 by %c32_i32_53 dim 1 : vector<2x128xf32>, i32 -> vector<2x128xf32>
    %79 = arith.addf %77, %78 : vector<2x128xf32>
    %c64_i32_54 = arith.constant 64 : i32
    %80 = tpu.dynamic_rotate %79 by %c64_i32_54 dim 1 : vector<2x128xf32>, i32 -> vector<2x128xf32>
    %81 = arith.addf %79, %80 : vector<2x128xf32>
    %cst_55 = arith.constant 0.001953125 : f32
    %82 = vector.broadcast %cst_55 : f32 to vector<2x128xf32>
    %83 = arith.mulf %81, %82 : vector<2x128xf32>
    %84 = vector.extract_strided_slice %83 {offsets = [0, 0], sizes = [1, 128], strides = [1, 1]} : vector<2x128xf32> to vector<1x128xf32>
    %85 = vector.extract_strided_slice %83 {offsets = [1, 0], sizes = [1, 128], strides = [1, 1]} : vector<2x128xf32> to vector<1x128xf32>
    %86 = arith.mulf %84, %84 : vector<1x128xf32>
    %87 = arith.subf %85, %86 : vector<1x128xf32>
    %88 = vector.broadcast %84 : vector<1x128xf32> to vector<32x128xf32>
    %89 = arith.subf %65, %88 : vector<32x128xf32>
    %cst_56 = arith.constant 9.99999974E-6 : f32
    %90 = vector.broadcast %cst_56 : f32 to vector<1x128xf32>
    %91 = arith.addf %87, %90 : vector<1x128xf32>
    %92 = math.rsqrt %91 : vector<1x128xf32>
    %93 = arith.mulf %66, %92 : vector<1x128xf32>
    %94 = vector.broadcast %93 : vector<1x128xf32> to vector<32x128xf32>
    %95 = arith.mulf %89, %94 : vector<32x128xf32>
    %96 = vector.broadcast %67 : vector<1x128xf32> to vector<32x128xf32>
    %97 = arith.addf %95, %96 : vector<32x128xf32>
    %c0_57 = arith.constant 0 : index
    %c0_58 = arith.constant 0 : index
    %c0_59 = arith.constant 0 : index
    %98 = vector.load %arg0[%c0_57, %c0_58, %c0_59] : memref<2x16x128xf32, #tpu.memory_space<vmem>>, vector<2x16x128xf32>
    %99 = vector.shape_cast %98 : vector<2x16x128xf32> to vector<32x128xf32>
    %100 = arith.addf %99, %97 : vector<32x128xf32>
    %cst_60 = arith.constant 0.000000e+00 : f32
    %101 = vector.broadcast %cst_60 : f32 to vector<32x128xf32>
    %102 = arith.maximumf %100, %101 : vector<32x128xf32>
    %103 = vector.shape_cast %102 : vector<32x128xf32> to vector<2x16x128xf32>
    %c0_61 = arith.constant 0 : index
    %c0_62 = arith.constant 0 : index
    %c0_63 = arith.constant 0 : index
    %104 = vector.load %arg7[%c0_61, %c0_62, %c0_63] : memref<2x16x128xf32, #tpu.memory_space<vmem>>, vector<2x16x128xf32>
    tpu.vector_store %arg7[%c0_61, %c0_62, %c0_63], %103 {strides = array<i32>} : memref<2x16x128xf32, #tpu.memory_space<vmem>>, vector<2x16x128xf32>,
    return
  }
}

</mosaic_0001>

<bundles_post_ra>
// kernel: resnet_basic_block_nhwc.1
= control target key start
LH: loop header
LB: loop body
LE: loop exit
PB: predicated region body
PF: predicated region fallthrough
CT: control target
= control target key end

     0   :  { %v1090_v1 = vmov 0.0   ;;  %vm371_vm0 = vcmask 1040384   ;;  %s1093_s11 = smov 32   ;;  %s1094_s12 = smov 64   ;;  %s1394_s1 = inlined_call_operand.vmem [shape: bf16[384,128], index: 1, kind: input, shape index: {}]   ;;  %s1395_s0 = inlined_call_operand.vmem [shape: f32[2,16,128], index: 0, kind: input, shape index: {}, may-alias: {0,7}]   ;;  %s1396_s4 = inlined_call_operand.vmem [shape: bf16[384,128], index: 4, kind: input, shape index: {}]   ;;  %s1397_s2 = inlined_call_operand.vmem [shape: f32[1,128], index: 2, kind: input, shape index: {}]   ;;  %s1398_s3 = inlined_call_operand.vmem [shape: f32[1,128], index: 3, kind: input, shape index: {}]   ;;  %s1399_s5 = inlined_call_operand.vmem [shape: f32[1,128], index: 5, kind: input, shape index: {}]   ;;  %s1400_s6 = inlined_call_operand.vmem [shape: f32[1,128], index: 6, kind: input, shape index: {}]   ;;  %s1401_s7 = inlined_call_operand.vmem [shape: f32[2,16,128], index: 7, kind: output, shape index: {}, may-alias: {0,7}]  }
   0x1   :  { %v1038_v0 = vld [vmem:[%s1394_s1 + $0x40] sm:$0xff]   ;;  %27 = vst [vmem:[#allocation2] sm:$0x1] %v1090_v1  ;;  %28 = vst [vmem:[#allocation2 + $0x18] sm:$0x1] %v1090_v1  ;;  %v1041_v4 = vld [vmem:[%s1394_s1 + $0x48] sm:$0xff]  }
   0x2   :  { %29 = vst [vmem:[#allocation2 + $0x11] sm:$0x1] %v1090_v1  ;;  %30 = vst [vmem:[#allocation2 + $0x29] sm:$0x1] %v1090_v1  ;;  %v1039_v2 = vld [vmem:[%s1394_s1] sm:$0xff]   ;;  %916 = vmatprep.subr.bf16.mxu0 %v1038_v0  ;;  %v1042_v5 = vld [vmem:[%s1394_s1 + $0x8] sm:$0xff]  }
   0x3   :  { %v1040_v3 = vld [vmem:[%s1394_s1 + $0x80] sm:$0xff]   ;;  %917 = vmatpush3.bf16.msra.mxu0 %v1039_v2  ;;  %v1043_v6 = vld [vmem:[%s1394_s1 + $0x88] sm:$0xff]   ;;  %v1044_v7 = vld [vmem:[%s1394_s1 + $0x50] sm:$0xff]  }
   0x4   :  { %992 = vmatprep.subr.bf16.mxu1 %v1040_v3  ;;  %918 = vmatprep.subr.bf16.mxu0 %v1041_v4  ;;  %v1045_v8 = vld [vmem:[%s1394_s1 + $0x10] sm:$0xff]   ;;  %v1047_v10 = vld [vmem:[%s1394_s1 + $0x58] sm:$0xff]   ;;  %v1050_v13 = vld [vmem:[%s1394_s1 + $0x60] sm:$0xff]  }
   0x5   :  { %993 = vmatpush3.bf16.msra.mxu1 %v1040_v3  ;;  %v1046_v9 = vld [vmem:[%s1394_s1 + $0x90] sm:$0xff]   ;;  %v1048_v11 = vld [vmem:[%s1394_s1 + $0x18] sm:$0xff]   ;;  %v1052_v14 = vld [vmem:[%s1394_s1 + $0xa0] sm:$0xff]  }
   0x6   :  { %994 = vmatprep.subr.bf16.mxu1 %v1043_v6  ;;  %v1049_v12 = vld [vmem:[%s1394_s1 + $0x98] sm:$0xff]   ;;  %v1051_v15 = vld [vmem:[%s1394_s1 + $0x20] sm:$0xff]   ;;  %v1053_v16 = vld [vmem:[%s1394_s1 + $0x68] sm:$0xff]  }
   0x7   :  { %919 = vmatpush3.bf16.msra.mxu0 %v1042_v5  ;;  %v1055_v17 = vld [vmem:[%s1394_s1 + $0xa8] sm:$0xff]   ;;  %v1056_v19 = vld [vmem:[%s1394_s1 + $0x70] sm:$0xff]   ;;  %v1059_v22 = vld [vmem:[%s1394_s1 + $0x78] sm:$0xff]  }
   0x8   :  { %920 = vmatprep.subr.bf16.mxu0 %v1044_v7  ;;  %v1054_v18 = vld [vmem:[%s1394_s1 + $0x28] sm:$0xff]   ;;  %v1057_v20 = vld [vmem:[%s1394_s1 + $0x30] sm:$0xff]   ;;  %v1205_v23 = vld [vmem:[%s1395_s0] sm:$0xff] }
   0x9   :  { %995 = vmatpush3.bf16.msra.mxu1 %v1043_v6  ;;  %v1058_v21 = vld [vmem:[%s1394_s1 + $0xb0] sm:$0xff]   ;;  %v1210_v24 = vld [vmem:[%s1395_s0 + $0x8] sm:$0xff]  ;;  %35 = vst [vmem:[#allocation2 + $0x1] sm:$0xff] %v1205_v23  ;;  %v1224_v27 = vld [vmem:[%s1395_s0 + $0x18] sm:$0xff] }
   0xa   :  { %996 = vmatprep.subr.bf16.mxu1 %v1046_v9  ;;  %v1215_v25 = vld [vmem:[%s1395_s0 + $0x10] sm:$0xff]  ;;  %36 = vst [vmem:[#allocation2 + $0x9] sm:$0xff] %v1210_v24  ;;  %v49_v26 = vpack.c.bf16 %v1210_v24, %v1205_v23  ;;  %v1061_v28 = vld [vmem:[%s1394_s1 + $0xb8] sm:$0xff]   ;;  %38 = vst [vmem:[#allocation2 + $0x21] sm:$0xff] %v1224_v27  ;;  %s1091_s0 = smov 8  }
   0xb   :  { %921 = vmatpush3.bf16.msra.mxu0 %v1045_v8  ;;  %37 = vst [vmem:[#allocation2 + $0x19] sm:$0xff] %v1215_v25  ;;  %v1060_v29 = vld [vmem:[%s1394_s1 + $0x38] sm:$0xff]   ;;  %v50_v33 = vpack.c.bf16 %v1224_v27, %v1215_v25  ;;  %s1092_s1 = smov 16  }
   0xc   :  { %922 = vmatprep.subr.bf16.mxu0 %v1047_v10  ;;  %281 = vmatprep.mubr.bf16.mxu0 %v49_v26 }
   0xd   :  { %997 = vmatpush3.bf16.msra.mxu1 %v1046_v9 }
   0xe   :  { %998 = vmatprep.subr.bf16.mxu1 %v1049_v12 }
   0xf   :  { %923 = vmatpush3.bf16.msra.mxu0 %v1048_v11 }
  0x10   :  { %924 = vmatprep.subr.bf16.mxu0 %v1050_v13  ;;  %v39_v30 = vld [vmem:[#allocation2] sm:$0xff] }
  0x11   :  { %999 = vmatpush3.bf16.msra.mxu1 %v1049_v12  ;;  %v40_v31 = vld [vmem:[#allocation2 + $0x8] sm:$0xff] }
  0x12   :  { %1000 = vmatprep.subr.bf16.mxu1 %v1052_v14  ;;  %v51_v32 = vld [vmem:[#allocation2 + $0x2] sm:$0xff]  ;;  %v43_v34 = vpack.c.bf16 %v40_v31, %v39_v30  ;;  %v52_v35 = vld [vmem:[#allocation2 + $0xa] sm:$0xff]  ;;  %v53_v36 = vld [vmem:[#allocation2 + $0x1a] sm:$0xff] }
  0x13   :  { %925 = vmatpush3.bf16.msra.mxu0 %v1051_v15  ;;  %v54_v37 = vld [vmem:[#allocation2 + $0x22] sm:$0xff]  ;;  %v55_v38 = vpack.c.bf16 %v52_v35, %v51_v32  ;;  %v41_v40 = vld [vmem:[#allocation2 + $0x18] sm:$0xff] }
  0x14   :  { %926 = vmatprep.subr.bf16.mxu0 %v1053_v16  ;;  %v56_v39 = vpack.c.bf16 %v54_v37, %v53_v36  ;;  %v42_v41 = vld [vmem:[#allocation2 + $0x20] sm:$0xff]  ;;  %v1065_v35 = vld [vmem:[%s1396_s4 + $0x48] sm:$0xff]  }
  0x15   :  { %1001 = vmatpush3.bf16.msra.mxu1 %v1052_v14  ;;  %1008 = vmatprep.mubr.bf16.mxu1 %v55_v38  ;;  %v44_v42 = vpack.c.bf16 %v42_v41, %v41_v40  ;;  %v1062_v32 = vld [vmem:[%s1396_s4 + $0x40] sm:$0xff]   ;;  %v1066_v36 = vld [vmem:[%s1396_s4 + $0x88] sm:$0xff]   ;;  %v1068_v38 = vld [vmem:[%s1396_s4 + $0x50] sm:$0xff]  }
  0x16   :  { %1002 = vmatprep.subr.bf16.mxu1 %v1055_v17  ;;  %v1067_v37 = vld [vmem:[%s1396_s4 + $0x8] sm:$0xff]   ;;  %v1070_v40 = vld [vmem:[%s1396_s4 + $0x10] sm:$0xff]   ;;  %v1071_v41 = vld [vmem:[%s1396_s4 + $0x58] sm:$0xff]  }
  0x17   :  { %927 = vmatpush3.bf16.msra.mxu0 %v1054_v18 }
  0x18   :  { %928 = vmatprep.subr.bf16.mxu0 %v1056_v19 }
  0x19   :  { %1003 = vmatpush3.bf16.msra.mxu1 %v1055_v17 }
  0x1a   :  { %1004 = vmatprep.subr.bf16.mxu1 %v1058_v21 }
  0x1b   :  { %929 = vmatpush3.bf16.msra.mxu0 %v1057_v20 }
  0x1c   :  { %930 = vmatprep.subr.bf16.mxu0 %v1059_v22 }
  0x1d   :  { %1005 = vmatpush3.bf16.msra.mxu1 %v1058_v21 }
  0x1e   :  { %1006 = vmatprep.subr.bf16.mxu1 %v1061_v28 }
  0x1f   :  { %931 = vmatpush3.bf16.msra.mxu0 %v1060_v29 }
  0x20   :  { %954 = vmatprep.subr.bf16.mxu0 %v1062_v32 }
  0x21   :  { %1007 = vmatpush3.bf16.msra.mxu1 %v1061_v28 }
  0x22   :  { %282 = vmatmul.mubr.bf16.vlgmr.msra.gmra.mrb[0].mxu0 %v43_v34  ;;  %v1064_v34 = vld [vmem:[%s1396_s4] sm:$0xff]  }
  0x23   :  { %289 = vmatprep.mubr.bf16.mxu0 %v50_v33  ;;  %v1063_v33 = vld [vmem:[%s1396_s4 + $0x80] sm:$0xff]   ;;  %955 = vmatpush3.bf16.msra.mxu0 %v1064_v34 }
  0x24   :  { %1009 = vmatmul.mubr.bf16.vlgmr.msra.gmra.mrb[0].mxu1 %v56_v39  ;;  %1012 = vmatprep.subr.bf16.mxu1 %v1063_v33  ;;  %v1069_v39 = vld [vmem:[%s1396_s4 + $0x90] sm:$0xff]  }
  0x25   :  { %1013 = vmatpush3.bf16.msra.mxu1 %v1063_v33  ;;  %956 = vmatprep.subr.bf16.mxu0 %v1065_v35 }
  0x26   :  { %1014 = vmatprep.subr.bf16.mxu1 %v1066_v36 }
  0x27   :  { %957 = vmatpush3.bf16.msra.mxu0 %v1067_v37 }
  0x28   :  { %958 = vmatprep.subr.bf16.mxu0 %v1068_v38 }
  0x29   :  { %1015 = vmatpush3.bf16.msra.mxu1 %v1066_v36 }
  0x2a   :  { %290 = vmatmul.mubr.bf16.gmra.mrb[4].mxu0 %v44_v42  ;;  %1016 = vmatprep.subr.bf16.mxu1 %v1069_v39  ;;  %v1072_v42 = vld [vmem:[%s1396_s4 + $0x98] sm:$0xff]  }
  0x2b   :  { %959 = vmatpush3.bf16.msra.mxu0 %v1070_v40 }
  0x2c   :  { %960 = vmatprep.subr.bf16.mxu0 %v1071_v41 }
  0x2d   :  { %1017 = vmatpush3.bf16.msra.mxu1 %v1069_v39 }
  0x2e   :  { %1018 = vmatprep.subr.bf16.mxu1 %v1072_v42 }
  0x31   :  { %1019 = vmatpush3.bf16.msra.mxu1 %v1072_v42 }
  0xf5   :  { %v932_v43 = vpop.f32.mrb[0].mxu0 }
  0xf6   :  { %v933_v44 = vpop.f32.mrb[1].mxu0 }
  0xf7   :  { %v934_v45 = vadd.f32 %v933_v44, %v932_v43  ;;  %v935_v46 = vpop.f32.mrb[2].mxu0  ;;  %v1010_v47 = vpop.f32.mrb[0].mxu1  ;;  %v1073_v43 = vld [vmem:[%s1396_s4 + $0x18] sm:$0xff]   ;;  %v1074_v44 = vld [vmem:[%s1396_s4 + $0x60] sm:$0xff]  }
  0xf8   :  { %v936_v48 = vpop.f32.mrb[3].mxu0  ;;  %v332_v49 = vpop.f32.mrb[1].mxu1  ;;  %961 = vmatpush3.bf16.msra.mxu0 %v1073_v43 }
  0xf9   :  { %v937_v50 = vadd.f32 %v936_v48, %v935_v46  ;;  %v1236_v51 = vadd.f32 %v934_v45, %v332_v49  ;;  %v1011_v52 = vpop.f32.mrb[2].mxu1  ;;  %v1075_v45 = vld [vmem:[%s1396_s4 + $0xa0] sm:$0xff]   ;;  %962 = vmatprep.subr.bf16.mxu0 %v1074_v44  ;;  %v1078_v48 = vld [vmem:[%s1396_s4 + $0xa8] sm:$0xff]  }
  0xfa   :  { %v335_v53 = vpop.f32.mrb[3].mxu1  ;;  %v1076_v46 = vld [vmem:[%s1396_s4 + $0x20] sm:$0xff]   ;;  %1020 = vmatprep.subr.bf16.mxu1 %v1075_v45  ;;  %v1079_v49 = vld [vmem:[%s1396_s4 + $0x28] sm:$0xff]  }
  0xfb   :  { %v1238_v54 = vadd.f32 %v937_v50, %v335_v53  ;;  %v358_v61 = vmul.f32 %v1236_v51, %v1236_v51  ;;  %1021 = vmatpush3.bf16.msra.mxu1 %v1075_v45  ;;  %v1080_v50 = vld [vmem:[%s1396_s4 + $0x70] sm:$0xff]  }
  0xfc   :  { %963 = vmatpush3.bf16.msra.mxu0 %v1076_v46  ;;  %1022 = vmatprep.subr.bf16.mxu1 %v1078_v48  ;;  %v1082_v53 = vld [vmem:[%s1396_s4 + $0x30] sm:$0xff]  }
  0xfd   :  { %v938_v55 = vpop.f32.mrb[4].mxu0  ;;  %v359_v57 = vmul.f32 %v1238_v54, %v1238_v54  ;;  %v349_v62 = vadd.f32 %v1238_v54, %v1236_v51 }
  0xfe   :  { %v939_v56 = vpop.f32.mrb[5].mxu0 }
  0xff   :  { %v940_v58 = vadd.f32 %v939_v56, %v938_v55  ;;  %v941_v59 = vpop.f32.mrb[6].mxu0  ;;  %v362_v1 = vadd.f32 %v359_v57, %v358_v61  ;;  %1023 = vmatpush3.bf16.msra.mxu1 %v1078_v48  ;;  %v1083_v55 = vld [vmem:[%s1396_s4 + $0x78] sm:$0xff]  }
 0x100   :  { %v942_v60 = vpop.f32.mrb[7].mxu0  ;;  %v1084_v56 = vld [vmem:[%s1396_s4 + $0xb8] sm:$0xff]  }
 0x101   :  { %v1246_v63 = vadd.f32 %v1010_v47, %v940_v58  ;;  %v943_v0 = vadd.f32 %v942_v60, %v941_v59  ;;  %v1077_v47 = vld [vmem:[%s1396_s4 + $0x68] sm:$0xff]   ;;  %v1085_v57 = vld [vmem:[%s1396_s4 + $0x38] sm:$0xff]  }
 0x102   :  { %964 = vmatprep.subr.bf16.mxu0 %v1077_v47 }
 0x103   :  { %v350_v2 = vadd.f32 %v349_v62, %v1246_v63  ;;  %v360_v3 = vmul.f32 %v1246_v63, %v1246_v63  ;;  %v1251_v4 = vadd.f32 %v1011_v52, %v943_v0  ;;  %v1081_v52 = vld [vmem:[%s1396_s4 + $0xb0] sm:$0xff]   ;;  %965 = vmatpush3.bf16.msra.mxu0 %v1079_v49 }
 0x104   :  { %966 = vmatprep.subr.bf16.mxu0 %v1080_v50  ;;  %1024 = vmatprep.subr.bf16.mxu1 %v1081_v52 }
 0x105   :  { %v363_v5 = vadd.f32 %v362_v1, %v360_v3  ;;  %v351_v6 = vadd.f32 %v350_v2, %v1251_v4  ;;  %v361_v7 = vmul.f32 %v1251_v4, %v1251_v4  ;;  %1025 = vmatpush3.bf16.msra.mxu1 %v1081_v52  ;;  %v1095_v2 = vmov 1966171168  }
 0x106   :  { %1026 = vmatprep.subr.bf16.mxu1 %v1084_v56  ;;  %v403_v3 = vunpack.c.l.s4 %v1095_v2 }
 0x107   :  { %v352_v8 = vrot.slane %v351_v6, 4  ;;  %v364_v9 = vadd.f32 %v363_v5, %v361_v7  ;;  %967 = vmatpush3.bf16.msra.mxu0 %v1082_v53  ;;  %v391_v5 = vlaneseq }
 0x108   :  { %968 = vmatprep.subr.bf16.mxu0 %v1083_v55 }
 0x109   :  { %v353_v10 = vadd.f32 %v352_v8, %v351_v6  ;;  %v365_v11 = vrot.slane %v364_v9, 4  ;;  %1027 = vmatpush3.bf16.msra.mxu1 %v1084_v56  ;;  %v404_v6 = vunpack.c.0.s8 %v403_v3  ;;  %v392_v7 = vshrl.u32 %v391_v5, 7 }
 0x10b   :  { %v354_v12 = vrot.slane %v353_v10, 2  ;;  %v366_v13 = vadd.f32 %v365_v11, %v364_v9  ;;  %969 = vmatpush3.bf16.msra.mxu0 %v1085_v57  ;;  %v1333_v8 = vsub.s32 %v404_v6, %v392_v7 }
 0x10d   :  { %v355_v14 = vadd.f32 %v354_v12, %v353_v10  ;;  %v367_v15 = vrot.slane %v366_v13, 2  ;;  %v1335_v10 = vsub.s32 0, %v392_v7 }
 0x10f   :  { %v356_v16 = vrot.slane %v355_v14, 1  ;;  %v368_v17 = vadd.f32 %v367_v15, %v366_v13  ;;  %v347_v13 = vld [vmem:[%s1397_s2] sm:$0x1] }
 0x111   :  { %v369_v18 = vrot.slane %v368_v17, 1  ;;  %v357_v19 = vadd.f32 %v356_v16, %v355_v14 }
 0x113   :  { %v370_v20 = vadd.f32 %v369_v18, %v368_v17 }
 0x115   :  { %v372_v21 = vsel %vm371_vm0, %v357_v19, %v370_v20 }
 0x116   :  { %373 = vrot.lane.b32.xlu0 %v372_v21, %s1091_s0 }
 0x188   :  { %v374_v22 = vpop.permute.xlu0 %373 }
 0x189   :  { %v375_v26 = vadd.f32 %v374_v22, %v372_v21  ;;  %v890_v22 = vld [vmem:[%s1398_s3] ss:$0 sm:$0xff] }
 0x18b   :  { %376 = vrot.lane.b32.xlu0 %v375_v26, %s1092_s1 }
 0x1fd   :  { %v377_v28 = vpop.permute.xlu0 %376 }
 0x1fe   :  { %v378_v29 = vadd.f32 %v377_v28, %v375_v26 }
 0x200   :  { %379 = vrot.lane.b32.xlu1 %v378_v29, %s1093_s11 }
 0x272   :  { %v380_v30 = vpop.permute.xlu1 %379 }
 0x273   :  { %v381_v31 = vadd.f32 %v380_v30, %v378_v29 }
 0x275   :  { %382 = vrot.lane.b32.xlu1 %v381_v31, %s1094_s12 }
 0x2e7   :  { %v383_v58 = vpop.permute.xlu1 %382 }
 0x2e8   :  { %v384_v59 = vadd.f32 %v383_v58, %v381_v31 }
 0x2ea   :  { %v385_v60 = vmul.f32 0.001953125, %v384_v59 }
 0x2ec   :  { %v386_v61 = vmul.f32 %v385_v60, %v385_v60  ;;  %v394_v14 = vrot.slane %v385_v60, %v1335_v10 }
 0x2ee   :  { %v388_v62 = vrot.slane %v386_v61, 7  ;;  %v395_v17 = vsub.f32 %v1236_v51, %v394_v14  ;;  %v396_v18 = vsub.f32 %v1238_v54, %v394_v14  ;;  %v397_v19 = vsub.f32 %v1246_v63, %v394_v14 }
 0x2ef   :  { %v398_v20 = vsub.f32 %v1251_v4, %v394_v14 }
 0x2f0   :  { %v390_v0 = vsub.f32 %v385_v60, %v388_v62 }
 0x2f2   :  { %v399_v1 = vadd.f32 1e-05, %v390_v0 }
 0x2f4   :  { %1086 = vrsqrt.f32 %v399_v1 }
 0x2fe   :  { %v1087_v9 = vpop.eup %1086 }
 0x2ff   :  { %v408_v11 = vrot.slane %v1087_v9, %v1333_v8 }
 0x301   :  { %v409_v12 = vcombine.high %v408_v11, %v408_v11 }
 0x303   :  { %v416_v15 = vrot.slane %v409_v12, %v1333_v8 }
 0x305   :  { %v418_v16 = vmul.f32 %v416_v15, %v347_v13 }
 0x307   :  { %v423_v21 = vrot.slane %v418_v16, %v1335_v10 }
 0x309   :  { %v425_v26 = vmul.f32 %v423_v21, %v395_v17  ;;  %v426_v28 = vmul.f32 %v423_v21, %v396_v18  ;;  %v427_v29 = vmul.f32 %v423_v21, %v397_v19  ;;  %v428_v30 = vmul.f32 %v423_v21, %v398_v20 }
 0x30b   :  { %v435_v31 = vadd.f32 %v890_v22, %v425_v26  ;;  %v436_v32 = vadd.f32 %v890_v22, %v426_v28  ;;  %v437_v33 = vadd.f32 %v890_v22, %v427_v29  ;;  %v438_v51 = vadd.f32 %v890_v22, %v428_v30 }
 0x30d   :  { %v439_v34 = vmax.f32 %v435_v31, 0.0  ;;  %v440_v54 = vmax.f32 %v436_v32, 0.0  ;;  %v441_v35 = vmax.f32 %v437_v33, 0.0  ;;  %v442_v63 = vmax.f32 %v438_v51, 0.0 }
 0x30f   :  { %443 = vst [vmem:[#allocation2 + $0x1] sm:$0xff] %v439_v34  ;;  %444 = vst [vmem:[#allocation2 + $0x9] sm:$0xff] %v440_v54  ;;  %v457_v4 = vpack.c.bf16 %v440_v54, %v439_v34  ;;  %v458_v45 = vpack.c.bf16 %v442_v63, %v441_v35 }
 0x310   :  { %445 = vst [vmem:[#allocation2 + $0x19] sm:$0xff] %v441_v35  ;;  %446 = vst [vmem:[#allocation2 + $0x21] sm:$0xff] %v442_v63 }
 0x311   :  { %689 = vmatprep.mubr.bf16.mxu0 %v457_v4 }
 0x316   :  { %v459_v36 = vld [vmem:[#allocation2 + $0x2] sm:$0xff]  ;;  %v460_v37 = vld [vmem:[#allocation2 + $0xa] sm:$0xff] }
 0x317   :  { %v447_v38 = vld [vmem:[#allocation2] sm:$0xff]  ;;  %v463_v39 = vpack.c.bf16 %v460_v37, %v459_v36  ;;  %v448_v40 = vld [vmem:[#allocation2 + $0x8] sm:$0xff]  ;;  %v449_v46 = vld [vmem:[#allocation2 + $0x18] sm:$0xff] }
 0x318   :  { %v461_v41 = vld [vmem:[#allocation2 + $0x1a] sm:$0xff]  ;;  %v462_v42 = vld [vmem:[#allocation2 + $0x22] sm:$0xff]  ;;  %v451_v43 = vpack.c.bf16 %v448_v40, %v447_v38 }
 0x319   :  { %v464_v44 = vpack.c.bf16 %v462_v42, %v461_v41  ;;  %1028 = vmatprep.mubr.bf16.mxu1 %v463_v39  ;;  %v450_v47 = vld [vmem:[#allocation2 + $0x20] sm:$0xff] }
 0x31a   :  { %690 = vmatmul.mubr.bf16.vlgmr.msra.gmra.mrb[8].mxu0 %v451_v43  ;;  %v452_v48 = vpack.c.bf16 %v450_v47, %v449_v46 }
 0x31b   :  { %1029 = vmatmul.mubr.bf16.vlgmr.msra.gmra.mrb[4].mxu1 %v464_v44  ;;  %697 = vmatprep.mubr.bf16.mxu0 %v458_v45 }
 0x322   :  { %698 = vmatmul.mubr.bf16.gmra.mrb[12].mxu0 %v452_v48 }
 0x3ed   :  { %v970_v49 = vpop.f32.mrb[8].mxu0 }
 0x3ee   :  { %v1030_v50 = vpop.f32.mrb[4].mxu1  ;;  %v971_v52 = vpop.f32.mrb[9].mxu0 }
 0x3ef   :  { %v740_v53 = vpop.f32.mrb[5].mxu1  ;;  %v972_v55 = vadd.f32 %v971_v52, %v970_v49  ;;  %v973_v56 = vpop.f32.mrb[10].mxu0 }
 0x3f0   :  { %v1031_v57 = vpop.f32.mrb[6].mxu1  ;;  %v974_v58 = vpop.f32.mrb[11].mxu0 }
 0x3f1   :  { %v743_v59 = vpop.f32.mrb[7].mxu1  ;;  %v1351_v60 = vadd.f32 %v972_v55, %v740_v53  ;;  %v975_v61 = vadd.f32 %v974_v58, %v973_v56 }
 0x3f3   :  { %v1353_v62 = vadd.f32 %v975_v61, %v743_v59  ;;  %v766_v7 = vmul.f32 %v1351_v60, %v1351_v60 }
 0x3f5   :  { %v976_v0 = vpop.f32.mrb[12].mxu0  ;;  %v767_v2 = vmul.f32 %v1353_v62, %v1353_v62  ;;  %v757_v9 = vadd.f32 %v1353_v62, %v1351_v60 }
 0x3f6   :  { %v977_v1 = vpop.f32.mrb[13].mxu0 }
 0x3f7   :  { %v978_v3 = vadd.f32 %v977_v1, %v976_v0  ;;  %v979_v5 = vpop.f32.mrb[14].mxu0  ;;  %v770_v13 = vadd.f32 %v767_v2, %v766_v7  ;;  %v915_v0 = vld [vmem:[%s1400_s6] ss:$0 sm:$0xff] }
 0x3f8   :  { %v980_v6 = vpop.f32.mrb[15].mxu0 }
 0x3f9   :  { %v749_v11 = vadd.f32 %v1030_v50, %v978_v3  ;;  %v981_v12 = vadd.f32 %v980_v6, %v979_v5  ;;  %v755_v50 = vld [vmem:[%s1399_s5] sm:$0x1] }
 0x3fb   :  { %v758_v14 = vadd.f32 %v757_v9, %v749_v11  ;;  %v768_v15 = vmul.f32 %v749_v11, %v749_v11  ;;  %v752_v16 = vadd.f32 %v1031_v57, %v981_v12 }
 0x3fd   :  { %v771_v17 = vadd.f32 %v770_v13, %v768_v15  ;;  %v759_v18 = vadd.f32 %v758_v14, %v752_v16  ;;  %v769_v19 = vmul.f32 %v752_v16, %v752_v16 }
 0x3ff   :  { %v760_v20 = vrot.slane %v759_v18, 4  ;;  %v772_v21 = vadd.f32 %v771_v17, %v769_v19 }
 0x401   :  { %v761_v22 = vadd.f32 %v760_v20, %v759_v18  ;;  %v773_v26 = vrot.slane %v772_v21, 4 }
 0x403   :  { %v762_v28 = vrot.slane %v761_v22, 2  ;;  %v774_v29 = vadd.f32 %v773_v26, %v772_v21 }
 0x405   :  { %v763_v30 = vadd.f32 %v762_v28, %v761_v22  ;;  %v775_v31 = vrot.slane %v774_v29, 2 }
 0x407   :  { %v764_v32 = vrot.slane %v763_v30, 1  ;;  %v776_v33 = vadd.f32 %v775_v31, %v774_v29 }
 0x409   :  { %v777_v51 = vrot.slane %v776_v33, 1  ;;  %v765_v34 = vadd.f32 %v764_v32, %v763_v30 }
 0x40b   :  { %v778_v54 = vadd.f32 %v777_v51, %v776_v33 }
 0x40d   :  { %v779_v35 = vsel %vm371_vm0, %v765_v34, %v778_v54 }
 0x40e   :  { %780 = vrot.lane.b32.xlu0 %v779_v35, %s1091_s0 }
 0x480   :  { %v781_v63 = vpop.permute.xlu0 %780 }
 0x481   :  { %v782_v4 = vadd.f32 %v781_v63, %v779_v35 }
 0x483   :  { %783 = vrot.lane.b32.xlu1 %v782_v4, %s1092_s1 }
 0x4f5   :  { %v784_v36 = vpop.permute.xlu1 %783 }
 0x4f6   :  { %v785_v37 = vadd.f32 %v784_v36, %v782_v4 }
 0x4f8   :  { %786 = vrot.lane.b32.xlu0 %v785_v37, %s1093_s11 }
 0x56a   :  { %v787_v38 = vpop.permute.xlu0 %786 }
 0x56b   :  { %v788_v39 = vadd.f32 %v787_v38, %v785_v37 }
 0x56d   :  { %789 = vrot.lane.b32.xlu1 %v788_v39, %s1094_s12 }
 0x5df   :  { %v790_v40 = vpop.permute.xlu1 %789 }
 0x5e0   :  { %v791_v41 = vadd.f32 %v790_v40, %v788_v39 }
 0x5e2   :  { %v792_v42 = vmul.f32 0.001953125, %v791_v41 }
 0x5e4   :  { %v793_v43 = vmul.f32 %v792_v42, %v792_v42  ;;  %v801_v52 = vrot.slane %v792_v42, %v1335_v10 }
 0x5e6   :  { %v795_v44 = vrot.slane %v793_v43, 7  ;;  %v802_v56 = vsub.f32 %v1351_v60, %v801_v52  ;;  %v803_v57 = vsub.f32 %v1353_v62, %v801_v52  ;;  %v804_v58 = vsub.f32 %v749_v11, %v801_v52 }
 0x5e7   :  { %v805_v59 = vsub.f32 %v752_v16, %v801_v52 }
 0x5e8   :  { %v797_v45 = vsub.f32 %v792_v42, %v795_v44 }
 0x5ea   :  { %v806_v46 = vadd.f32 1e-05, %v797_v45 }
 0x5ec   :  { %1088 = vrsqrt.f32 %v806_v46 }
 0x5f6   :  { %v1089_v47 = vpop.eup %1088 }
 0x5f7   :  { %v815_v48 = vrot.slane %v1089_v47, %v1333_v8 }
 0x5f9   :  { %v816_v49 = vcombine.high %v815_v48, %v815_v48 }
 0x5fb   :  { %v823_v53 = vrot.slane %v816_v49, %v1333_v8 }
 0x5fd   :  { %v825_v55 = vmul.f32 %v823_v53, %v755_v50 }
 0x5ff   :  { %v830_v61 = vrot.slane %v825_v55, %v1335_v10 }
 0x601   :  { %v832_v1 = vmul.f32 %v830_v61, %v802_v56  ;;  %v833_v2 = vmul.f32 %v830_v61, %v803_v57  ;;  %v834_v3 = vmul.f32 %v830_v61, %v804_v58  ;;  %v835_v5 = vmul.f32 %v830_v61, %v805_v59 }
 0x603   :  { %v842_v6 = vadd.f32 %v915_v0, %v832_v1  ;;  %v843_v7 = vadd.f32 %v915_v0, %v833_v2  ;;  %v844_v8 = vadd.f32 %v915_v0, %v834_v3  ;;  %v845_v9 = vadd.f32 %v915_v0, %v835_v5 }
 0x605   :  { %v850_v60 = vadd.f32 %v842_v6, %v1205_v23  ;;  %v851_v62 = vadd.f32 %v843_v7, %v1210_v24  ;;  %v852_v11 = vadd.f32 %v844_v8, %v1215_v25  ;;  %v853_v10 = vadd.f32 %v845_v9, %v1224_v27 }
 0x607   :  { %v854_v12 = vmax.f32 %v850_v60, 0.0  ;;  %v855_v13 = vmax.f32 %v851_v62, 0.0  ;;  %v856_v14 = vmax.f32 %v852_v11, 0.0  ;;  %v857_v15 = vmax.f32 %v853_v10, 0.0 }
 0x609   :  { %858 = vst [vmem:[%s1401_s7] sm:$0xff] %v854_v12  ;;  %859 = vst [vmem:[%s1401_s7 + $0x8] sm:$0xff] %v855_v13 }
 0x60a   :  { %860 = vst [vmem:[%s1401_s7 + $0x10] sm:$0xff] %v856_v14  ;;  %861 = vst [vmem:[%s1401_s7 + $0x18] sm:$0xff] %v857_v15 }

</bundles_post_ra>
